<compile_context>
chip_gen: v7x
topology: tpu7x:2x2x1
jax: 0.10.0
libtpu: 0.0.40
codegen_flags: <defaults>
</compile_context>

<pallas_src>
import functools
import random

import numpy as np
import jax
import jax.numpy as jnp
from jax.experimental import pallas as pl
from jax.experimental.pallas import tpu as pltpu

_EPS = 1e-6  # PyTorch F.pairwise_distance default eps


# ----------------------------------------------------------------------------
# Pallas kernel: fused gather + triplet margin loss (p=2), accumulated over T
# ----------------------------------------------------------------------------
def _triplet_margin_loss_kernel(
    a_idx_ref, p_idx_ref, n_idx_ref,   # scalar-prefetch index vectors (SMEM)
    a_ref, p_ref, n_ref,               # gathered rows, each (1, 1, D) in VMEM
    o_ref,                             # (1, 1) f32 output block (resident)
    acc_ref,                           # (1, 1) f32 VMEM scratch accumulator
    *, margin, inv_t,
):
    i = pl.program_id(0)

    @pl.when(i == 0)
    def _init():
        acc_ref[...] = jnp.zeros_like(acc_ref)

    # upcast only inside the kernel (keeps HBM/DMA traffic at input dtype)
    a = a_ref[...].astype(jnp.float32)
    p = p_ref[...].astype(jnp.float32)
    n = n_ref[...].astype(jnp.float32)

    # PyTorch pairwise_distance: ||x - y + eps||_2
    dp = jnp.sqrt(jnp.sum((a - p + _EPS) ** 2, axis=-1))  # (1, 1)
    dn = jnp.sqrt(jnp.sum((a - n + _EPS) ** 2, axis=-1))  # (1, 1)

    acc_ref[...] += jnp.maximum(dp - dn + margin, 0.0)

    @pl.when(i == pl.num_programs(0) - 1)
    def _finalize():
        # divide by the true triplet count; output written back to HBM once
        o_ref[...] = acc_ref[...] * inv_t


def triplet_margin_loss_pallas(embeddings, a_idx, p_idx, n_idx, margin):
    """Fused gather + TripletMarginLoss(p=2) on TPU via Pallas."""
    B, D = embeddings.shape
    T = int(a_idx.shape[0])

    # (B, D) -> (B, 1, D) so each gathered block is (1, 1, D): the last two
    # block dims match the full array dims (no (8,128) block-shape issues),
    # and D stays lane-mapped.
    emb3 = embeddings.reshape(B, 1, D)

    kernel = functools.partial(
        _triplet_margin_loss_kernel, margin=float(margin), inv_t=1.0 / float(T)
    )

    # index_maps receive (grid index, *scalar-prefetch refs)
    def a_map(i, ai, pi, ni):
        return (ai[i], 0, 0)

    def p_map(i, ai, pi, ni):
        return (pi[i], 0, 0)

    def n_map(i, ai, pi, ni):
        return (ni[i], 0, 0)

    def o_map(i, ai, pi, ni):
        return (0, 0)

    grid_spec = pltpu.PrefetchScalarGridSpec(
        num_scalar_prefetch=3,
        grid=(T,),
        in_specs=[
            pl.BlockSpec((1, 1, D), a_map),
            pl.BlockSpec((1, 1, D), p_map),
            pl.BlockSpec((1, 1, D), n_map),
        ],
        out_specs=pl.BlockSpec((1, 1), o_map),
        scratch_shapes=[pltpu.VMEM((1, 1), jnp.float32)],
    )

    out = pl.pallas_call(
        kernel,
        out_shape=jax.ShapeDtypeStruct((1, 1), jnp.float32),
        grid_spec=grid_spec,
        compiler_params=pltpu.CompilerParams(
            dimension_semantics=("arbitrary",),  # reduction axis (resident output)
        ),
    )(a_idx, p_idx, n_idx, emb3, emb3, emb3)
    return out[0, 0]


# ----------------------------------------------------------------------------
# Host-side glue: randomized online triplet selector, mirroring the PyTorch
# module's triplet_selector (numpy + python random, deterministically seeded).
# ----------------------------------------------------------------------------
def triplet_selector(embeddings_np, target_np, margin, rng):
    classes = np.unique(target_np)
    num_classes = len(classes)
    digit_indices = [np.where(target_np == c)[0] for c in classes]
    anchor_indices, positive_indices, negative_indices = [], [], []

    def dist(x, y):
        return float(np.linalg.norm(x - y, ord=2))

    for index_pos, arr_pos in enumerate(digit_indices):
        len_arr_pos = len(arr_pos)
        for i in range(len_arr_pos):
            anchor_idx = int(arr_pos[i])
            anchor = embeddings_np[anchor_idx]
            positive_idx = anchor_idx
            while positive_idx == anchor_idx:
                positive_idx = int(arr_pos[rng.randint(0, len_arr_pos - 1)])
            pos_dist = dist(anchor, embeddings_np[positive_idx])
            count = 0
            min_dist = float("inf")
            negative_idx = anchor_idx
            while count < 150:
                index_neg = rng.randint(0, num_classes - 1)
                if index_neg != index_pos:
                    count += 1
                    arr_neg = digit_indices[index_neg]
                    n = rng.randint(0, len(arr_neg) - 1)
                    neg_idx = int(arr_neg[n])
                    neg_dist = dist(anchor, embeddings_np[neg_idx])
                    if pos_dist < neg_dist and neg_dist - margin < pos_dist:
                        negative_idx = neg_idx
                        break
                    elif neg_dist < min_dist:
                        negative_idx = neg_idx
                        min_dist = neg_dist
            anchor_indices.append(anchor_idx)
            positive_indices.append(positive_idx)
            negative_indices.append(negative_idx)
    return anchor_indices, positive_indices, negative_indices


# ----------------------------------------------------------------------------
# TripletLoss module equivalent
# ----------------------------------------------------------------------------
class TripletLossPallas:
    def __init__(self, margin, seed=0):
        self.margin = float(margin)
        self._rng = random.Random(seed)  # deterministic selector randomness

    def __call__(self, embeddings, target, size_average=True):
        # TODO(synk): the randomized, data-dependent triplet selection (host
        # RNG + data-dependent while-loops) has no Pallas equivalent; it stays
        # on host and forces one device->host transfer of the embeddings.
        emb_np = np.asarray(embeddings, dtype=np.float32)
        tgt_np = np.asarray(target)
        a_idx, p_idx, n_idx = triplet_selector(emb_np, tgt_np, self.margin, self._rng)

        if len(a_idx) == 0:
            # guard the empty-triplet case (mean over 0 elements would be NaN)
            return jnp.float32(0.0)

        a_idx = jnp.asarray(a_idx, dtype=jnp.int32)
        p_idx = jnp.asarray(p_idx, dtype=jnp.int32)
        n_idx = jnp.asarray(n_idx, dtype=jnp.int32)
        # gather is fused into the kernel via scalar-prefetched indices; no
        # host-side jnp.take and no pre-cast of the embeddings.
        return triplet_margin_loss_pallas(embeddings, a_idx, p_idx, n_idx, self.margin)


# ----------------------------------------------------------------------------
# Demo / smoke test
# ----------------------------------------------------------------------------
if __name__ == "__main__":
    B, D, NUM_CLASSES = 16, 32, 4
    key = jax.random.PRNGKey(0)
    k_emb, _ = jax.random.split(key)

    embeddings = jax.random.normal(k_emb, (B, D), dtype=jnp.float32)
    # ensure every class appears at least twice
    target = np.array([i % NUM_CLASSES for i in range(B)], dtype=np.int32)

    loss_fn = TripletLossPallas(margin=1.0, seed=0)
    loss = loss_fn(embeddings, target)
    loss = jax.block_until_ready(loss)

    # reference check (pure numpy, same semantics + same seeded selector)
    emb_np = np.asarray(embeddings, dtype=np.float32)
    a_idx, p_idx, n_idx = triplet_selector(emb_np, target, 1.0, random.Random(0))
    a, p, n = emb_np[a_idx], emb_np[p_idx], emb_np[n_idx]
    dp = np.sqrt(np.sum((a - p + _EPS) ** 2, axis=-1))
    dn = np.sqrt(np.sum((a - n + _EPS) ** 2, axis=-1))
    ref = np.mean(np.maximum(dp - dn + 1.0, 0.0))
    assert np.allclose(np.asarray(loss), ref, rtol=1e-5, atol=1e-5), (loss, ref)

    print("KERNEL_OK")
</pallas_src>

<mosaic_0001>
module attributes {stable_mosaic.version = 11 : i64} {
  func.func @_triplet_margin_loss_kernel(%arg0: i32, %arg1: memref<16xi32, #tpu.memory_space<smem>>, %arg2: memref<16xi32, #tpu.memory_space<smem>>, %arg3: memref<16xi32, #tpu.memory_space<smem>>, %arg4: memref<1x1x32xf32, #tpu.memory_space<vmem>>, %arg5: memref<1x1x32xf32, #tpu.memory_space<vmem>>, %arg6: memref<1x1x32xf32, #tpu.memory_space<vmem>>, %arg7: memref<1x1xf32, #tpu.memory_space<vmem>>, %arg8: memref<1x1xf32, #tpu.memory_space<vmem>>) attributes {dimension_semantics = [#tpu.dimension_semantics<arbitrary>], iteration_bounds = array<i64: 16>, scalar_prefetch = 3 : i64, scratch_operands = 1 : i64, tpu.core_type = #tpu.core_type<tc>, window_params = [{transform_indices = @transform_0, window_bounds = array<i64: 1, 1, 32>}, {transform_indices = @transform_1, window_bounds = array<i64: 1, 1, 32>}, {transform_indices = @transform_2, window_bounds = array<i64: 1, 1, 32>}, {pipeline_mode = #tpu.pipeline_mode<synchronous>, transform_indices = @transform_3, window_bounds = array<i64: 1, 1>}]} {
    %c0_i32 = arith.constant 0 : i32
    %0 = arith.cmpi eq, %arg0, %c0_i32 : i32
    %1 = arith.extui %0 : i1 to i32
    %c0_i32_0 = arith.constant 0 : i32
    %2 = arith.cmpi ne, %1, %c0_i32_0 : i32
    scf.if %2 {
      %cst_19 = arith.constant 0.000000e+00 : f32
      %29 = vector.broadcast %cst_19 : f32 to vector<1x1xf32>
      %c0_20 = arith.constant 0 : index
      %c0_21 = arith.constant 0 : index
      %30 = vector.load %arg8[%c0_20, %c0_21] : memref<1x1xf32, #tpu.memory_space<vmem>>, vector<1x1xf32>
      tpu.vector_store %arg8[%c0_20, %c0_21], %29 {strides = array<i32>} : memref<1x1xf32, #tpu.memory_space<vmem>>, vector<1x1xf32>,
    } else {
    }
    %c0 = arith.constant 0 : index
    %c0_1 = arith.constant 0 : index
    %c0_2 = arith.constant 0 : index
    %3 = vector.load %arg4[%c0, %c0_1, %c0_2] : memref<1x1x32xf32, #tpu.memory_space<vmem>>, vector<1x1x32xf32>
    %c0_3 = arith.constant 0 : index
    %c0_4 = arith.constant 0 : index
    %c0_5 = arith.constant 0 : index
    %4 = vector.load %arg5[%c0_3, %c0_4, %c0_5] : memref<1x1x32xf32, #tpu.memory_space<vmem>>, vector<1x1x32xf32>
    %c0_6 = arith.constant 0 : index
    %c0_7 = arith.constant 0 : index
    %c0_8 = arith.constant 0 : index
    %5 = vector.load %arg6[%c0_6, %c0_7, %c0_8] : memref<1x1x32xf32, #tpu.memory_space<vmem>>, vector<1x1x32xf32>
    %6 = arith.subf %3, %4 : vector<1x1x32xf32>
    %cst = arith.constant 9.99999997E-7 : f32
    %7 = vector.broadcast %cst : f32 to vector<1x1x32xf32>
    %8 = arith.addf %6, %7 : vector<1x1x32xf32>
    %9 = arith.mulf %8, %8 : vector<1x1x32xf32>
    %cst_9 = arith.constant dense<0.000000e+00> : vector<1x1xf32>
    %10 = vector.multi_reduction <add>, %9, %cst_9 [2] : vector<1x1x32xf32> to vector<1x1xf32>
    %11 = math.sqrt %10 : vector<1x1xf32>
    %12 = arith.subf %3, %5 : vector<1x1x32xf32>
    %cst_10 = arith.constant 9.99999997E-7 : f32
    %13 = vector.broadcast %cst_10 : f32 to vector<1x1x32xf32>
    %14 = arith.addf %12, %13 : vector<1x1x32xf32>
    %15 = arith.mulf %14, %14 : vector<1x1x32xf32>
    %cst_11 = arith.constant dense<0.000000e+00> : vector<1x1xf32>
    %16 = vector.multi_reduction <add>, %15, %cst_11 [2] : vector<1x1x32xf32> to vector<1x1xf32>
    %17 = math.sqrt %16 : vector<1x1xf32>
    %c0_12 = arith.constant 0 : index
    %c0_13 = arith.constant 0 : index
    %18 = vector.load %arg8[%c0_12, %c0_13] : memref<1x1xf32, #tpu.memory_space<vmem>>, vector<1x1xf32>
    %19 = arith.subf %11, %17 : vector<1x1xf32>
    %cst_14 = arith.constant 1.000000e+00 : f32
    %20 = vector.broadcast %cst_14 : f32 to vector<1x1xf32>
    %21 = arith.addf %19, %20 : vector<1x1xf32>
    %cst_15 = arith.constant 0.000000e+00 : f32
    %22 = vector.broadcast %cst_15 : f32 to vector<1x1xf32>
    %23 = arith.maximumf %21, %22 : vector<1x1xf32>
    %24 = arith.addf %18, %23 : vector<1x1xf32>
    %c0_16 = arith.constant 0 : index
    %c0_17 = arith.constant 0 : index
    %25 = vector.load %arg8[%c0_16, %c0_17] : memref<1x1xf32, #tpu.memory_space<vmem>>, vector<1x1xf32>
    tpu.vector_store %arg8[%c0_16, %c0_17], %24 {strides = array<i32>} : memref<1x1xf32, #tpu.memory_space<vmem>>, vector<1x1xf32>,
    %c15_i32 = arith.constant 15 : i32
    %26 = arith.cmpi eq, %arg0, %c15_i32 : i32
    %27 = arith.extui %26 : i1 to i32
    %c0_i32_18 = arith.constant 0 : i32
    %28 = arith.cmpi ne, %27, %c0_i32_18 : i32
    scf.if %28 {
      %c0_19 = arith.constant 0 : index
      %c0_20 = arith.constant 0 : index
      %29 = vector.load %arg8[%c0_19, %c0_20] : memref<1x1xf32, #tpu.memory_space<vmem>>, vector<1x1xf32>
      %cst_21 = arith.constant 6.250000e-02 : f32
      %30 = vector.broadcast %cst_21 : f32 to vector<1x1xf32>
      %31 = arith.mulf %29, %30 : vector<1x1xf32>
      %c0_22 = arith.constant 0 : index
      %c0_23 = arith.constant 0 : index
      %32 = vector.load %arg7[%c0_22, %c0_23] : memref<1x1xf32, #tpu.memory_space<vmem>>, vector<1x1xf32>
      tpu.vector_store %arg7[%c0_22, %c0_23], %31 {strides = array<i32>} : memref<1x1xf32, #tpu.memory_space<vmem>>, vector<1x1xf32>,
    } else {
    }
    return
  }
  func.func @transform_0(%arg0: i32, %arg1: memref<16xi32, #tpu.memory_space<smem>>, %arg2: memref<16xi32, #tpu.memory_space<smem>>, %arg3: memref<16xi32, #tpu.memory_space<smem>>) -> (i32, i32, i32) {
    %0 = arith.index_cast %arg0 : i32 to index
    %1 = memref.load %arg1[%0] : memref<16xi32, #tpu.memory_space<smem>>
    %c0_i32 = arith.constant 0 : i32
    %c0_i32_0 = arith.constant 0 : i32
    %c0_i32_1 = arith.constant 0 : i32
    return %1, %c0_i32, %c0_i32_0 : i32, i32, i32
  }
  func.func @transform_1(%arg0: i32, %arg1: memref<16xi32, #tpu.memory_space<smem>>, %arg2: memref<16xi32, #tpu.memory_space<smem>>, %arg3: memref<16xi32, #tpu.memory_space<smem>>) -> (i32, i32, i32) {
    %0 = arith.index_cast %arg0 : i32 to index
    %1 = memref.load %arg2[%0] : memref<16xi32, #tpu.memory_space<smem>>
    %c0_i32 = arith.constant 0 : i32
    %c0_i32_0 = arith.constant 0 : i32
    %c0_i32_1 = arith.constant 0 : i32
    return %1, %c0_i32, %c0_i32_0 : i32, i32, i32
  }
  func.func @transform_2(%arg0: i32, %arg1: memref<16xi32, #tpu.memory_space<smem>>, %arg2: memref<16xi32, #tpu.memory_space<smem>>, %arg3: memref<16xi32, #tpu.memory_space<smem>>) -> (i32, i32, i32) {
    %0 = arith.index_cast %arg0 : i32 to index
    %1 = memref.load %arg3[%0] : memref<16xi32, #tpu.memory_space<smem>>
    %c0_i32 = arith.constant 0 : i32
    %c0_i32_0 = arith.constant 0 : i32
    %c0_i32_1 = arith.constant 0 : i32
    return %1, %c0_i32, %c0_i32_0 : i32, i32, i32
  }
  func.func @transform_3(%arg0: i32, %arg1: memref<16xi32, #tpu.memory_space<smem>>, %arg2: memref<16xi32, #tpu.memory_space<smem>>, %arg3: memref<16xi32, #tpu.memory_space<smem>>) -> (i32, i32) {
    %c0_i32 = arith.constant 0 : i32
    %c0_i32_0 = arith.constant 0 : i32
    %c0_i32_1 = arith.constant 0 : i32
    return %c0_i32, %c0_i32_0 : i32, i32
  }
}

</mosaic_0001>

<bundles_post_ra>
// kernel: tpu_custom_call.1
= control target key start
LH: loop header
LB: loop body
LE: loop exit
PB: predicated region body
PF: predicated region fallthrough
CT: control target
= control target key end

     0   :  { %s985_s0 = inlined_call_operand.hbm [shape: s32[16], index: 0, kind: input, shape index: {}]   ;;  %s986_s3 = inlined_call_operand.hbm [shape: f32[16,1,32], index: 3, kind: input, shape index: {}]   ;;  %s987_s4 = inlined_call_operand.hbm [shape: f32[16,1,32], index: 4, kind: input, shape index: {}]   ;;  %s988_s5 = inlined_call_operand.vmem [shape: f32[16,1,32], index: 5, kind: input, shape index: {}]   ;;  %s989_s6 = inlined_call_operand.hbm [shape: f32[1,1], index: 6, kind: output, shape index: {}]   ;;  %s990_s1 = inlined_call_operand.vmem [shape: s32[16], index: 1, kind: input, shape index: {}]   ;;  %s991_s2 = inlined_call_operand.vmem [shape: s32[16], index: 2, kind: input, shape index: {}]  }
   0x1   :  { %s485_s23 = scalar_lea.hbm %s985_s0, 16 }
   0x2   :  { %p486_p0 = scmp.ne.s32.totalorder %s985_s0, %s485_s23  ;;  %p489_p1 = scmp.lt.u32.totalorder %s485_s23, %s985_s0 }
   0x4   :  { %p491_p2 = pnand %p489_p1, %p486_p0 }
   0x6   :  { %494 = shalt.err (!%p491_p2)  }
   0x7   :  { %s675_s28 = smov [#allocation4]   ;;  %s13_s9 = sshll.u32 %s990_s1, 4  ;;  %s14_s9 = int_to_ptr.vmem [resolvable:$true] %s13_s9 }
   0x8   :  { %12 = dma.hbm_to_smem %s985_s0, 16, %s675_s28, [#allocation3] }
   0x9   :  { %s17_s12 = sshll.u32 %s991_s2, 4  ;;  %s495_s13 = scalar_lea.vmem %s14_s9, 16  ;;  %s18_s12 = int_to_ptr.vmem [resolvable:$true] %s17_s12 }
   0xa   :  { %p496_p3 = scmp.ne.s32.totalorder %s14_s9, %s495_s13  ;;  %p500_p4 = scmp.lt.s32.totalorder %s14_s9, %s14_s9 }
   0xb   :  { %p501_p5 = scmp.lt.s32.totalorder %s495_s13, %s495_s13 }
   0xd   :  { %p502_p6 = por %p501_p5, %p500_p4 }
   0xf   :  { %p503_p7 = pnand %p502_p6, %p496_p3 }
  0x11   :  { %506 = shalt.err (!%p503_p7)  }
  0x12   :  { %s676_s14 = smov [#allocation5]   ;;  %s507_s0 = scalar_lea.vmem %s18_s12, 16 }
  0x13   :  { %16 = dma.vmem_to_smem %s14_s9, 16, %s676_s14, [#allocation3] }
  0x14   :  { %p508_p8 = scmp.ne.s32.totalorder %s18_s12, %s507_s0  ;;  %p512_p9 = scmp.lt.s32.totalorder %s18_s12, %s18_s12 }
  0x15   :  { %p513_p10 = scmp.lt.s32.totalorder %s507_s0, %s507_s0 }
  0x17   :  { %p514_p11 = por %p513_p10, %p512_p9 }
  0x19   :  { %p515_p12 = pnand %p514_p11, %p508_p8 }
  0x1b   :  { %518 = shalt.err (!%p515_p12)  }
  0x1c   :  { %s677_s1 = smov [#allocation6]  }
  0x1d   :  { %20 = dma.vmem_to_smem %s18_s12, 16, %s677_s1, [#allocation3] }
  0x1e   :  { %633 = dma.done.wait [#allocation3], 48 }
  0x1f   :  { %634 = vsyncadd [#allocation3], 4294967248 }
  0x20   :  { %22 = sfence }
  0x21   :  { %23 = vsyncpa [#allocation8], 0 }
  0x22   :  { %25 = vsyncpa [#allocation8 + $0x1], 0 }
  0x23   :  { %26 = vsyncpa [#allocation11], 0 }
  0x24   :  { %28 = vsyncpa [#allocation11 + $0x1], 0 }
  0x25   :  { %29 = vsyncpa [#allocation9], 0  ;;  %s735_s2 = smov 0   ;;  %s737_s15 = smov 0  }
  0x26   :  { %s739_s16 = smov 0   ;;  %s741_s17 = smov 0  }
  0x27   :  { %s743_s18 = smov 0   ;;  %s745_s19 = smov 0  }
  0x28   :  { %s747_s20 = smov 0  }
  0x29 LB: > { %s769_s21 = sadd.s32 4294967295, %s673_s20   ;;  %s772_s22 = sadd.s32 1, %s673_s20   ;;  %s673_s20 = sphi %s747_s20, %s1016_s20   ;;  %s669_s19 = sphi %s745_s19, %s1015_s19   ;;  %s665_s18 = sphi %s743_s18, %s1014_s18   ;;  %s661_s17 = sphi %s741_s17, %s1013_s17   ;;  %s657_s16 = sphi %s739_s16, %s1012_s16   ;;  %s653_s15 = sphi %s737_s15, %s1011_s15   ;;  %s649_s2 = sphi %s735_s2, %s1010_s2  }
  0x2a   : > { %s39_s23 = sld [smem:[#allocation4 + %s673_s20]]  ;;  %s44_s25 = sadd.s32 1, %s669_s19 }
  0x2b   : > { %s40_s24 = sld [smem:[#allocation4 + %s772_s22]]  ;;  %p51_p13 = scmp.ne.s32.totalorder %s669_s19, %s665_s18 }
  0x2c   : > { %p994_p0 = scmp.eq.s32.totalorder %s673_s20, 0  ;;  %p57_p1 = scmp.ne.s32.totalorder %s665_s18, %s661_s17 }
  0x2d   : > { %p993_p2 = scmp.eq.s32.totalorder %s769_s21, 0  ;;  %p992_p4 = scmp.lt.s32.totalorder %s673_s20, 16 }
  0x2e   : > { %p784_p3 = por %p994_p0, %p51_p13  ;;  %s158_s28 = sand.u32 1, %s669_s19  }
  0x2f   : > { %p791_p5 = por %p993_p2, %p57_p1  ;;  %s161_s9 = scalar_lea.vmem [#allocation7], %s158_s28 }
  0x30   : > { %s394_s30 = scalar_select %p784_p3, [#allocation4], [#allocation13] }
  0x31   : > { %s998_s27 = scalar_select %p791_p5, 1, 0 }
  0x32   : > { %s41_s29 = ssub.s32 %s39_s23, %s40_s24  ;;  %s1018_s30 = smov (!%p992_p4, %s394_s30), [#allocation15] }
  0x33   : > { %p42_p6 = scmp.eq.s32.totalorder %s41_s29, 0  ;;  %s169_s10 = sshll.u32 %s161_s9, 4  ;;  %s816_s10 = int_to_ptr.vmem [resolvable:$true] %s169_s10 }
  0x34   : > { %s395_s8 = scalar_select %p784_p3, %s673_s20, 0 }
  0x35   : > { %s799_s7 = scalar_select %p42_p6, %s669_s19, %s44_s25  }
  0x36   : > { %s1020_s8 = smov (!%p992_p4, %s395_s8), 0  ;;  %p812_p7 = pnand %p992_p4, %p784_p3 }
  0x37   : > { %s162_s12 = sld [smem:[%s1018_s30 + %s1020_s8]]  ;;  %p387_p8 = scmp.ge.s32.totalorder %s673_s20, 1 }
  0x38   : > { %p200_p9 = scmp.lt.s32.totalorder %s673_s20, 17  ;;  %s825_s0 = sld [smem:[#allocation5 + %s673_s20]] }
  0x39   : > { %s833_s24 = sld [smem:[#allocation5 + %s772_s22]]  ;;  %s159_s25 = scalar_lea.sflag [#allocation8], %s158_s28 }
  0x3a   : > { %p820_p10 = pnand %p387_p8, %p200_p9  ;;  %p521_p12 = pneg %p812_p7 }
  0x3b   : > { %s524_s8 = scalar_lea.hbm %s986_s3, 256 }
  0x3d   : > { %s385_s14 = sshll.u32 %s162_s12, 4 }
  0x3e   : > { %s830_s23 = scalar_lea.hbm %s986_s3, %s385_s14 }
  0x3f   : > { %s519_s26 = scalar_lea.hbm %s830_s23, 16  ;;  %p525_p3 = scmp.lt.u32.totalorder %s830_s23, %s986_s3 }
  0x40   : > { %p520_p11 = scmp.ne.s32.totalorder %s830_s23, %s519_s26  ;;  %p526_p6 = scmp.lt.u32.totalorder %s524_s8, %s519_s26 }
  0x41   : > { %p528_p9 = scmp.lt.u32.totalorder %s519_s26, %s830_s23 }
  0x42   : > { %p522_p13 = pnand %p521_p12, %p520_p11  ;;  %p527_p8 = por %p526_p6, %p525_p3 }
  0x44   : > { %p523_p1 = pneg %p522_p13  ;;  %p529_p4 = por %p528_p9, %p527_p8 }
  0x46   : > { %p530_p2 = pnand %p529_p4, %p523_p1 }
  0x48   : > { %533 = shalt.err (!%p530_p2)
}
  0x49   : > { %s534_s28 = scalar_lea.vmem %s816_s10, 16  ;;  %s678_s14 = smov [#allocation7]  }
  0x4a   : > { %p535_p11 = scmp.ne.s32.totalorder %s816_s10, %s534_s28  ;;  %s539_s1 = sshll.u32 %s678_s14, 4  ;;  %s540_s1 = int_to_ptr.vmem [resolvable:$false] %s539_s1 }
  0x4b   : > { %s541_s17 = scalar_lea.vmem %s540_s1, 32  ;;  %p542_p5 = scmp.lt.s32.totalorder %s816_s10, %s540_s1 }
  0x4c   : > { %p537_p13 = pnand %p535_p11, %p521_p12  ;;  %p543_p3 = scmp.lt.s32.totalorder %s541_s17, %s534_s28 }
  0x4e   : > { %p538_p0 = pneg %p537_p13  ;;  %p544_p6 = por %p543_p3, %p542_p5 }
  0x50   : > { %p545_p8 = pnand %p544_p6, %p538_p0 }
  0x52   : > { %548 = shalt.err (!%p545_p8)
}
  0x53   : > { %411 = dma.hbm_to_vmem [thread:$0]  (!%p812_p7), %s830_s23, 16, %s816_s10, %s159_s25  }
  0x54   : > { %p79_p0 = scmp.ne.s32.totalorder %s657_s16, %s653_s15  ;;  %p85_p2 = scmp.ne.s32.totalorder %s653_s15, %s649_s2 }
  0x55   : > { %p1001_p4 = scmp.eq.s32.totalorder %s673_s20, 0  ;;  %p1002_p12 = scmp.eq.s32.totalorder %s769_s21, 0 }
  0x56   : > { %s69_s26 = ssub.s32 %s825_s0, %s833_s24  ;;  %s72_s29 = sadd.s32 1, %s657_s16 }
  0x57   : > { %p81_p5 = por %p79_p0, %p1001_p4  ;;  %p868_p1 = por %p85_p2, %p1002_p12 }
  0x58   : > { %p70_p9 = scmp.eq.s32.totalorder %s69_s26, 0  ;;  %s176_s30 = sand.u32 1, %s657_s16  }
  0x59   : > { %s1003_s11 = scalar_select %p868_p1, 1, 0 }
  0x5a   : > { %s397_s8 = scalar_select %p81_p5, [#allocation5], [#allocation14] }
  0x5b   : > { %s877_s9 = scalar_select %p70_p9, %s657_s16, %s72_s29  }
  0x5c   : > { %s398_s12 = scalar_select %p81_p5, %s673_s20, 0 }
  0x5d   : > { %p1004_p11 = scmp.lt.s32.totalorder %s673_s20, 16  ;;  %s179_s0 = scalar_lea.vmem [#allocation10], %s176_s30 }
  0x5e   : > { %s187_s23 = sshll.u32 %s179_s0, 4  ;;  %s177_s20 = scalar_lea.sflag [#allocation11], %s176_s30  ;;  %s890_s23 = int_to_ptr.vmem [resolvable:$true] %s187_s23 }
  0x5f   : > { %s1022_s8 = smov (!%p1004_p11, %s397_s8), [#allocation16]  ;;  %p1005_p7 = pmov %p1004_p11 }
  0x60   : > { %s554_s29 = scalar_lea.hbm %s987_s4, 256 }
  0x61   : > { %s1024_s12 = smov (!%p1005_p7, %s398_s12), 0  ;;  %p1006_p13 = pmov %p1005_p7 }
  0x62   : > { %s180_s10 = sld [smem:[%s1022_s8 + %s1024_s12]] }
  0x63   : > { %p886_p3 = pnand %p1006_p13, %p81_p5 }
  0x65   : > { %p551_p8 = pneg %p886_p3 }
  0x68   : > { %s386_s24 = sshll.u32 %s180_s10, 4 }
  0x69   : > { %s895_s14 = scalar_lea.hbm %s987_s4, %s386_s24 }
  0x6a   : > { %s549_s1 = scalar_lea.hbm %s895_s14, 16  ;;  %p555_p4 = scmp.lt.u32.totalorder %s895_s14, %s987_s4 }
  0x6b   : > { %p550_p6 = scmp.ne.s32.totalorder %s895_s14, %s549_s1  ;;  %p556_p5 = scmp.lt.u32.totalorder %s554_s29, %s549_s1 }
  0x6c   : > { %p558_p9 = scmp.lt.u32.totalorder %s549_s1, %s895_s14 }
  0x6d   : > { %p552_p0 = pnand %p551_p8, %p550_p6  ;;  %p557_p12 = por %p556_p5, %p555_p4 }
  0x6f   : > { %p553_p2 = pneg %p552_p0  ;;  %p559_p11 = por %p558_p9, %p557_p12 }
  0x71   : > { %p560_p7 = pnand %p559_p11, %p553_p2 }
  0x73   : > { %563 = shalt.err (!%p560_p7)
}
  0x74   : > { %s564_s30 = scalar_lea.vmem %s890_s23, 16  ;;  %s679_s10 = smov [#allocation10]  }
  0x75   : > { %p565_p13 = scmp.ne.s32.totalorder %s890_s23, %s564_s30  ;;  %s569_s0 = sshll.u32 %s679_s10, 4  ;;  %s570_s0 = int_to_ptr.vmem [resolvable:$false] %s569_s0 }
  0x76   : > { %s571_s24 = scalar_lea.vmem %s570_s0, 32  ;;  %p572_p1 = scmp.lt.s32.totalorder %s890_s23, %s570_s0 }
  0x77   : > { %p567_p6 = pnand %p565_p13, %p551_p8  ;;  %p573_p4 = scmp.lt.s32.totalorder %s571_s24, %s564_s30 }
  0x79   : > { %p568_p0 = pneg %p567_p6  ;;  %p574_p5 = por %p573_p4, %p572_p1 }
  0x7b   : > { %p575_p12 = pnand %p574_p5, %p568_p0 }
  0x7d   : > { %578 = shalt.err (!%p575_p12)
}
  0x7e   : > { %416 = dma.hbm_to_vmem [thread:$0]  (!%p886_p3), %s895_s14, 16, %s890_s23, %s177_s20  }
  0x7f   : > { %204 = sbr.rel (%p820_p10) target bundleno = 362 (0x16a), region = 32  ;;  %s206_s25 = sand.u32 (!%p820_p10), 1, %s665_s18  }
  0x80   : > { %s207_s28 = scalar_lea.sflag (!%p820_p10), [#allocation8], %s206_s25  ;;  %s209_s1 = scalar_lea.vmem (!%p820_p10), [#allocation7], %s206_s25 }
  0x81   : > { %p1008_p8 = scmp.ne.s32.totalorder (!%p820_p10), %s998_s27, 0 }
  0x86   : > { %636 = dma.done.wait (%p1008_p8), %s207_s28, 16  }
  0x87   : > { %638 = vsyncadd (%p1008_p8), %s207_s28, 4294967280  ;;  %s214_s17 = sand.u32 1, %s653_s15   ;;  %p1009_p1 = scmp.ne.s32.totalorder %s1003_s11, 0 }
  0x88   : > { %s215_s2 = scalar_lea.sflag [#allocation11], %s214_s17  ;;  %s217_s26 = scalar_lea.vmem [#allocation10], %s214_s17 }
  0x89   : > { %640 = dma.done.wait (%p1009_p1), %s215_s2, 16  }
  0x8a   : > { %642 = vsyncadd (%p1009_p1), %s215_s2, 4294967280  ;;  %s244_s13 = sld [smem:[#allocation6 + %s769_s21]]  ;;  %p388_p3 = scmp.ne.s32.totalorder %s769_s21, 0 }
  0x8b   : > { %vm253_vm0 = vcmask (!%p388_p3), 0   ;;  %v680_v0 = vmov (!%p388_p3), 0.0  }
  0x8c   : > { %254 = vst.msk [vmem:[#allocation2] sm:$0x1] (!%p388_p3), %vm253_vm0, %v680_v0 }
  0x8d   : > { %252 = sbr.rel (%p388_p3) target bundleno = 148 (0x94), region = 44 }
  0x90   : > { %p245_p10 = scmp.lt.s32.totalorder %s244_s13, 15 }
  0x92   : > { %s1026_s13 = smov (!%p245_p10, %s244_s13), 15 }
  0x93   : > { %s247_s20 = scalar_lea.vmem %s988_s5, %s1026_s13 }
  0x94 PF: > { %v255_v1 = vld [vmem:[%s209_s1] sm:$0x1]  ;;  %vm261_vm1 = vcmask 253952   ;;  %v285_v26 = vld [vmem:[#allocation2] sm:$0x1]  ;;  %vm290_vm6 = vcmask 0  }
  0x95   : > { %v256_v2 = vld [vmem:[%s217_s26] sm:$0x1]  ;;  %p389_p2 = scmp.ne.s32.totalorder %s769_s21, 15 }
  0x96   : > { %v258_v3 = vsub.f32 %v255_v1, %v256_v2  ;;  %v257_v4 = vld [vmem:[%s247_s20] sm:$0x1] }
  0x97   : > { %v272_v5 = vsub.f32 %v255_v1, %v257_v4 }
  0x98   : > { %v259_v6 = vadd.f32 1e-06, %v258_v3 }
  0x99   : > { %v273_v7 = vadd.f32 1e-06, %v272_v5 }
  0x9a   : > { %v260_v8 = vmul.f32 %v259_v6, %v259_v6 }
  0x9b   : > { %v274_v9 = vmul.f32 %v273_v7, %v273_v7 }
  0x9c   : > { %v262_v10 = vsel %vm261_vm1, %v260_v8, 0.0 }
  0x9d   : > { %263 = vadd.xlane.f32.xlu0 %v262_v10  ;;  %v275_v11 = vsel %vm261_vm1, %v274_v9, 0.0 }
  0xa1   : > { %276 = vadd.xlane.f32.xlu0 %v275_v11 }
 0x12a   : > { %v264_v12 = vpop.xlane.xlu0 %263 }
 0x12b   : > { %481 = vrsqrt.f32 %v264_v12  ;;  %vm267_vm2 = vcmp.eq.f32.partialorder %v264_v12, inf  ;;  %v270_v19 = vand.u32 2147483648, %v264_v12  ;;  %vm269_vm4 = vcmp.eq.f32.partialorder %v264_v12, 0.0 }
 0x12e   : > { %v277_v13 = vpop.xlane.xlu0 %276 }
 0x12f   : > { %483 = vrsqrt.f32 %v277_v13  ;;  %vm280_vm3 = vcmp.eq.f32.partialorder %v277_v13, inf  ;;  %v283_v20 = vand.u32 2147483648, %v277_v13  ;;  %vm282_vm5 = vcmp.eq.f32.partialorder %v277_v13, 0.0 }
 0x135   : > { %v482_v14 = vpop.eup %481 }
 0x136   : > { %v266_v15 = vmul.f32 %v482_v14, %v264_v12 }
 0x138   : > { %v268_v17 = vsel %vm267_vm2, %v264_v12, %v266_v15 }
 0x139   : > { %v484_v16 = vpop.eup %483  ;;  %v271_v22 = vsel %vm269_vm4, %v270_v19, %v268_v17 }
 0x13a   : > { %v279_v18 = vmul.f32 %v484_v16, %v277_v13 }
 0x13c   : > { %v281_v21 = vsel %vm280_vm3, %v277_v13, %v279_v18 }
 0x13d   : > { %v284_v23 = vsel %vm282_vm5, %v283_v20, %v281_v21 }
 0x13e   : > { %v286_v24 = vsub.f32 %v271_v22, %v284_v23 }
 0x140   : > { %v287_v25 = vadd.f32 1.0, %v286_v24  ;;  %295 = sbr.rel (%p389_p2) target bundleno = 337 (0x151), region = 48 }
 0x142   : > { %v288_v27 = vmax.f32 %v287_v25, 0.0 }
 0x144   : > { %v289_v28 = vadd.f32 %v288_v27, %v285_v26 }
 0x146   : > { %291 = vst.msk [vmem:[#allocation2] sm:$0x1] %vm290_vm6, %v289_v28 }
 0x14d   : > { %v296_v29 = vld [vmem:[#allocation2] sm:$0x1] }
 0x14e   : > { %v297_v30 = vmul.f32 0.0625, %v296_v29 }
 0x150   : > { %298 = vst.msk [vmem:[#allocation12] sm:$0x1] %vm290_vm6, %v297_v30 }
 0x151 PF: > { %p418_p9 = scmp.eq.s32.totalorder %s769_s21, 15  ;;  %s681_s27 = smov [#allocation12]  }
 0x152   : > { %s306_s11 = sshll.u32 %s681_s27, 4  ;;  %s307_s11 = int_to_ptr.vmem [resolvable:$true] %s306_s11 }
 0x153   : > { %s579_s29 = scalar_lea.vmem %s307_s11, 16  ;;  %s585_s8 = scalar_lea.vmem %s307_s11, 32 }
 0x154   : > { %p580_p11 = scmp.ne.s32.totalorder %s307_s11, %s579_s29  ;;  %p586_p6 = scmp.lt.s32.totalorder %s307_s11, %s307_s11 }
 0x155   : > { %p587_p0 = scmp.lt.s32.totalorder %s585_s8, %s579_s29 }
 0x156   : > { %p581_p7 = pnand %p580_p11, %p418_p9 }
 0x157   : > { %p588_p4 = por %p587_p0, %p586_p6 }
 0x158   : > { %p582_p13 = pneg %p581_p7 }
 0x15a   : > { %p589_p5 = pnand %p588_p4, %p582_p13 }
 0x15c   : > { %592 = shalt.err (!%p589_p5)
}
 0x15d   : > { %s593_s10 = scalar_lea.hbm %s989_s6, 16 }
 0x15e   : > { %p594_p12 = scmp.ne.s32.totalorder %s989_s6, %s593_s10  ;;  %p599_p10 = scmp.lt.u32.totalorder %s593_s10, %s989_s6 }
 0x160   : > { %p595_p8 = pnand %p594_p12, %p418_p9 }
 0x162   : > { %p596_p1 = pneg %p595_p8 }
 0x164   : > { %p601_p3 = pnand %p599_p10, %p596_p1 }
 0x166   : > { %604 = shalt.err (!%p601_p3)
}
 0x167   : > { %403 = dma.vmem_to_hbm [thread:$0]  (%p418_p9), %s307_s11, 16, %s989_s6, [#allocation9]  }
 0x168   : > { %644 = dma.done.wait (%p418_p9), [#allocation9], 16  }
 0x169   : > { %646 = vsyncadd (%p418_p9), [#allocation9], 4294967280 }
 0x16a PF: > { %p32_p2 = scmp.ge.s32.totalorder %s772_s22, 18   ;;  %s1010_s2 = smov %s653_s15 }
 0x16b   : > { %s1011_s15 = smov %s657_s16  ;;  %s1012_s16 = smov %s877_s9 }
 0x16c   : > { %s1013_s17 = smov %s665_s18  ;;  %s1014_s18 = smov %s669_s19 }
 0x16d   : > { %s1015_s19 = smov %s799_s7  ;;  %s1016_s20 = smov %s772_s22 }
 0x16e   :  { %34 = sbr.rel (!%p32_p2) target bundleno = 41 (0x29), region = 93 }
 0x175   :  { %319 = vsyncpa [#allocation8], 1 }
 0x176   :  { %321 = vsyncpa [#allocation8 + $0x1], 1 }
 0x177   :  { %322 = vsyncpa [#allocation11], 1 }
 0x178   :  { %324 = vsyncpa [#allocation11 + $0x1], 1 }
 0x179   :  { %325 = vsyncpa [#allocation9], 1 }
 0x17a   :  { %327 = vsyncpa [#allocation9 + $0x1], 1 }

</bundles_post_ra>
